<compile_context>
chip_gen: v7x
topology: tpu7x:2x2x1
jax: 0.10.0
libtpu: 0.0.40
codegen_flags: <defaults>
</compile_context>

<pallas_src>
import functools

import jax
import jax.numpy as jnp
from jax import lax
from jax.experimental import pallas as pl
from jax.experimental.pallas import tpu as pltpu

_HP = 128        # padded hidden / fused-head width (lane-dense, one vreg row)
_BIAS_ROWS = 8   # bias slab padded to one (8, 128) fp32 tile


def _round_up(n, m):
    return ((n + m - 1) // m) * m


def _pi_v_kernel(x_ref, w_ref, b_ref, out_ref, *, sp, a):
    """Fused fc1+relu, fc2+relu, joint pi/v head and masked softmax.

    x_ref  : (TB, sp)   f32   input rows (features zero-padded to sp)
    w_ref  : (sp+2*_HP, _HP) bf16  packed weights [w1 ; w2 ; w_head]
    b_ref  : (_BIAS_ROWS, _HP) f32 packed biases  [b1 ; b2 ; b_head ; 0...]
    out_ref: (TB, _HP)  f32   lane-dense slab: cols [0, a) probs, col a value
    """
    x = x_ref[...].astype(jnp.bfloat16)

    # Static, sublane-aligned slices of the packed bf16 weight slab
    # (sp is padded to a multiple of 16 so every offset is bf16-tile aligned).
    w1 = w_ref[pl.ds(0, sp), :]
    w2 = w_ref[pl.ds(sp, _HP), :]
    wh = w_ref[pl.ds(sp + _HP, _HP), :]

    b = b_ref[...]
    b1 = b[0:1, :]
    b2 = b[1:2, :]
    bh = b[2:3, :]

    # bf16 MXU matmuls with f32 accumulation; f32 bias added afterwards.
    # Hidden dim is zero-padded to 128 lanes; padding stays exactly zero
    # through bias-add / relu / subsequent matmuls.
    y1 = jnp.maximum(jnp.dot(x, w1, preferred_element_type=jnp.float32) + b1, 0.0)
    y2 = jnp.maximum(
        jnp.dot(y1.astype(jnp.bfloat16), w2, preferred_element_type=jnp.float32) + b2,
        0.0)

    # Single fused head matmul: cols [0, a) = policy logits, col a = value,
    # cols > a = zero padding.
    z = jnp.dot(y2.astype(jnp.bfloat16), wh, preferred_element_type=jnp.float32) + bh

    col = lax.broadcasted_iota(jnp.int32, z.shape, 1)
    is_pi = col < a

    # Softmax restricted to the policy columns.  Mask BEFORE exp so the value
    # and padding lanes contribute exactly exp(-inf) == 0 (no inf hazard).
    zm = jnp.where(is_pi, z, -jnp.inf)
    m = jnp.max(zm, axis=-1, keepdims=True)
    e = jnp.exp(zm - m)
    denom = jnp.sum(e, axis=-1, keepdims=True)
    inv = 1.0 / denom                # exact; (TB, 1) column, negligible cost
    probs = e * inv

    # probs is exactly zero on all non-policy lanes, so one add recovers the
    # value column; padded lanes stay zero.  Single lane-dense (TB,128) store.
    out_ref[...] = probs + jnp.where(col == a, z, 0.0)


def pack_params(params):
    """Pack the 8 Linear tensors into one bf16 weight slab + one f32 bias slab.

    Built once, reused for every forward call.  Zero padding is inert: padded
    hidden lanes stay zero through relu, and padded head columns are masked
    out of the softmax inside the kernel.
    """
    w1, b1 = params["w1"], params["b1"]
    w2, b2 = params["w2"], params["b2"]
    wpi, bpi = params["wpi"], params["bpi"]
    wv, bv = params["wv"], params["bv"]

    s, h = w1.shape
    a = wpi.shape[1]
    assert w2.shape == (h, h) and wv.shape == (h, 1)
    assert h <= _HP and (a + 1) <= _HP, "hidden / action sizes must fit 128 lanes"

    # Round to 16 so bf16 slab row-offsets stay sublane-tile aligned.
    sp = _round_up(s, 16)

    w1p = jnp.pad(w1, ((0, sp - s), (0, _HP - h)))                 # (sp, 128)
    w2p = jnp.pad(w2, ((0, _HP - h), (0, _HP - h)))                # (128, 128)
    wh = jnp.concatenate([wpi, wv], axis=1)                        # (h, a+1) fused head
    whp = jnp.pad(wh, ((0, _HP - h), (0, _HP - (a + 1))))          # (128, 128)
    w_slab = jnp.concatenate([w1p, w2p, whp], axis=0).astype(jnp.bfloat16)

    bhead = jnp.concatenate([bpi, bv], axis=1)                     # (1, a+1)
    b_slab = jnp.concatenate(
        [jnp.pad(b1, ((0, 0), (0, _HP - h))),
         jnp.pad(b2, ((0, 0), (0, _HP - h))),
         jnp.pad(bhead, ((0, 0), (0, _HP - (a + 1)))),
         jnp.zeros((_BIAS_ROWS - 3, _HP), jnp.float32)], axis=0)   # (8, 128)

    return dict(w_slab=w_slab, b_slab=b_slab,
                state_size=s, padded_state=sp, action_size=a, hidden=h)


def pi_v_fc_forward(x, packed, *, max_rows_per_block=2048):
    """Runs the full Pi_V_FC forward pass inside one Pallas kernel."""
    B, S = x.shape
    assert S == packed["state_size"]
    sp = packed["padded_state"]
    a = packed["action_size"]

    if sp != S:
        x = jnp.pad(x, ((0, 0), (0, sp - S)))

    # Pick the number of grid steps first, then a balanced 8-row-aligned tile:
    # padding is bounded by <8 rows per step.  Keep steps even (>=2) for
    # B >= 16 so "parallel" shards rows across both v7x TensorCores.
    steps = max(1, -(-B // max_rows_per_block))
    if B >= 16:
        steps = max(steps, 2)
        if steps % 2:
            steps += 1
    tb = _round_up(-(-B // steps), 8)
    b_pad = steps * tb
    if b_pad != B:
        x = jnp.pad(x, ((0, b_pad - B), (0, 0)))

    w_slab = packed["w_slab"]
    b_slab = packed["b_slab"]
    w_rows = w_slab.shape[0]

    # Real working set: double-buffered x/out tiles, resident slabs and a
    # generous allowance for the f32 intermediates.  ~16 MiB at tb=2048,
    # comfortably under every generation's VMEM.
    vmem_bytes = (2 * tb * sp * 4 + 2 * tb * _HP * 4 + 8 * tb * _HP * 4
                  + 2 * w_rows * _HP * 2 + 2 * _BIAS_ROWS * _HP * 4)
    vmem_bytes = max(int(vmem_bytes), 16 * 1024 * 1024)

    kernel = functools.partial(_pi_v_kernel, sp=sp, a=a)

    out = pl.pallas_call(
        kernel,
        out_shape=jax.ShapeDtypeStruct((b_pad, _HP), jnp.float32),
        grid=(steps,),
        in_specs=[
            pl.BlockSpec((tb, sp), lambda i: (i, 0)),           # stream x rows
            pl.BlockSpec((w_rows, _HP), lambda i: (0, 0)),      # weights resident
            pl.BlockSpec((_BIAS_ROWS, _HP), lambda i: (0, 0)),  # biases resident
        ],
        out_specs=pl.BlockSpec((tb, _HP), lambda i: (i, 0)),    # lane-dense output
        compiler_params=pltpu.CompilerParams(
            # batch rows are independent -> shard across v7x's 2 TensorCores
            dimension_semantics=("parallel",),
            vmem_limit_bytes=vmem_bytes,
        ),
    )(x, w_slab, b_slab)

    probs = out[:B, :a]      # softmax(pi(y2), dim=1)
    values = out[:B, a]      # v(y2).view(-1)
    return probs, values


def init_params(key, state_size, action_size, hidden=64):
    """Deterministic init mimicking torch.nn.Linear's U(-1/sqrt(in), 1/sqrt(in)).
    Weights stored as [in, out] (transposed vs torch's [out, in])."""
    ks = jax.random.split(key, 8)

    def linear(kw, kb, fan_in, fan_out):
        bound = 1.0 / jnp.sqrt(jnp.float32(fan_in))
        w = jax.random.uniform(kw, (fan_in, fan_out), jnp.float32, -bound, bound)
        b = jax.random.uniform(kb, (1, fan_out), jnp.float32, -bound, bound)
        return w, b

    w1, b1 = linear(ks[0], ks[1], state_size, hidden)
    w2, b2 = linear(ks[2], ks[3], hidden, hidden)
    wpi, bpi = linear(ks[4], ks[5], hidden, action_size)
    wv, bv = linear(ks[6], ks[7], hidden, 1)
    return dict(w1=w1, b1=b1, w2=w2, b2=b2, wpi=wpi, bpi=bpi, wv=wv, bv=bv)


def _reference_f32(x, p):
    """Pure f32 reference (exactly the torch module's math)."""
    y1 = jnp.maximum(x @ p["w1"] + p["b1"], 0.0)
    y2 = jnp.maximum(y1 @ p["w2"] + p["b2"], 0.0)
    probs = jax.nn.softmax(y2 @ p["wpi"] + p["bpi"], axis=1)
    values = (y2 @ p["wv"] + p["bv"]).reshape(-1)
    return probs, values


def _reference_matched(x, p):
    """Reference matching the kernel's numerics: bf16 matmul inputs, f32 accum."""
    def mm(a_, w_):
        return jnp.dot(a_.astype(jnp.bfloat16), w_.astype(jnp.bfloat16),
                       preferred_element_type=jnp.float32)
    y1 = jnp.maximum(mm(x, p["w1"]) + p["b1"], 0.0)
    y2 = jnp.maximum(mm(y1, p["w2"]) + p["b2"], 0.0)
    probs = jax.nn.softmax(mm(y2, p["wpi"]) + p["bpi"], axis=1)
    values = (mm(y2, p["wv"]) + p["bv"]).reshape(-1)
    return probs, values


if __name__ == "__main__":
    key = jax.random.PRNGKey(0)
    k_param, k_x1, k_x2 = jax.random.split(key, 3)

    state_size = 32
    action_size = 4

    params = init_params(k_param, state_size, action_size)
    packed = pack_params(params)   # built once, reused for every forward call

    # --- small batch: single grid step ---
    batch = 8
    x = jax.random.normal(k_x1, (batch, state_size), jnp.float32)
    probs, values = pi_v_fc_forward(x, packed)
    jax.block_until_ready((probs, values))

    assert probs.shape == (batch, action_size)
    assert values.shape == (batch,)

    mp, mv = _reference_matched(x, params)   # same bf16/f32-accum numerics
    fp, fv = _reference_f32(x, params)       # pure f32 (torch) numerics
    assert jnp.allclose(probs, mp, atol=1e-4, rtol=1e-3)
    assert jnp.allclose(values, mv, atol=1e-4, rtol=1e-3)
    assert jnp.allclose(probs, fp, atol=5e-2, rtol=5e-2)
    assert jnp.allclose(values, fv, atol=5e-2, rtol=5e-2)
    assert jnp.allclose(jnp.sum(probs, axis=1), 1.0, atol=1e-4)

    # --- larger batch: exercises multi-step grid + row-padding path ---
    batch2 = 300
    x2 = jax.random.normal(k_x2, (batch2, state_size), jnp.float32)
    probs2, values2 = pi_v_fc_forward(x2, packed)
    jax.block_until_ready((probs2, values2))

    assert probs2.shape == (batch2, action_size)
    assert values2.shape == (batch2,)
    mp2, mv2 = _reference_matched(x2, params)
    assert jnp.allclose(probs2, mp2, atol=1e-4, rtol=1e-3)
    assert jnp.allclose(values2, mv2, atol=1e-4, rtol=1e-3)
    assert jnp.allclose(jnp.sum(probs2, axis=1), 1.0, atol=1e-4)

    print("KERNEL_OK")
</pallas_src>

<mosaic_0001>
module attributes {stable_mosaic.version = 11 : i64} {
  func.func @_pi_v_kernel(%arg0: i32, %arg1: memref<8x32xf32, #tpu.memory_space<vmem>>, %arg2: memref<288x128xbf16, #tpu.memory_space<vmem>>, %arg3: memref<8x128xf32, #tpu.memory_space<vmem>>, %arg4: memref<8x128xf32, #tpu.memory_space<vmem>>) attributes {dimension_semantics = [#tpu.dimension_semantics<parallel>], iteration_bounds = array<i64: 1>, scalar_prefetch = 0 : i64, scratch_operands = 0 : i64, tpu.core_type = #tpu.core_type<tc>, window_params = [{transform_indices = @transform_0, window_bounds = array<i64: 8, 32>}, {pipeline_mode = #tpu.pipeline_mode<synchronous>, transform_indices = @transform_1, window_bounds = array<i64: 288, 128>}, {pipeline_mode = #tpu.pipeline_mode<synchronous>, transform_indices = @transform_2, window_bounds = array<i64: 8, 128>}, {transform_indices = @transform_3, window_bounds = array<i64: 8, 128>}]} {
    %c0 = arith.constant 0 : index
    %c0_0 = arith.constant 0 : index
    %0 = vector.load %arg1[%c0, %c0_0] : memref<8x32xf32, #tpu.memory_space<vmem>>, vector<8x32xf32>
    %1 = arith.truncf %0 : vector<8x32xf32> to vector<8x32xbf16>
    %c0_1 = arith.constant 0 : index
    %c0_2 = arith.constant 0 : index
    %2 = vector.load %arg2[%c0_1, %c0_2] : memref<288x128xbf16, #tpu.memory_space<vmem>>, vector<32x128xbf16>
    %c32 = arith.constant 32 : index
    %c0_3 = arith.constant 0 : index
    %3 = vector.load %arg2[%c32, %c0_3] : memref<288x128xbf16, #tpu.memory_space<vmem>>, vector<128x128xbf16>
    %c160 = arith.constant 160 : index
    %c0_4 = arith.constant 0 : index
    %4 = vector.load %arg2[%c160, %c0_4] : memref<288x128xbf16, #tpu.memory_space<vmem>>, vector<128x128xbf16>
    %c0_5 = arith.constant 0 : index
    %c0_6 = arith.constant 0 : index
    %5 = vector.load %arg3[%c0_5, %c0_6] : memref<8x128xf32, #tpu.memory_space<vmem>>, vector<8x128xf32>
    %6 = vector.extract_strided_slice %5 {offsets = [0, 0], sizes = [1, 128], strides = [1, 1]} : vector<8x128xf32> to vector<1x128xf32>
    %7 = vector.extract_strided_slice %5 {offsets = [1, 0], sizes = [1, 128], strides = [1, 1]} : vector<8x128xf32> to vector<1x128xf32>
    %8 = vector.extract_strided_slice %5 {offsets = [2, 0], sizes = [1, 128], strides = [1, 1]} : vector<8x128xf32> to vector<1x128xf32>
    %cst = arith.constant dense<0.000000e+00> : vector<8x128xf32>
    %9 = tpu.matmul %1, %2, %cst {dimension_numbers = #tpu.dot_dimension_numbers<[1], [0], [0], [1], [0, 0, 1, 1], [], []>} : vector<8x32xbf16>, vector<32x128xbf16>, vector<8x128xf32> -> vector<8x128xf32>
    %10 = vector.broadcast %6 : vector<1x128xf32> to vector<8x128xf32>
    %11 = arith.addf %9, %10 : vector<8x128xf32>
    %cst_7 = arith.constant 0.000000e+00 : f32
    %12 = vector.broadcast %cst_7 : f32 to vector<8x128xf32>
    %13 = arith.maximumf %11, %12 : vector<8x128xf32>
    %14 = arith.truncf %13 : vector<8x128xf32> to vector<8x128xbf16>
    %cst_8 = arith.constant dense<0.000000e+00> : vector<8x128xf32>
    %15 = tpu.matmul %14, %3, %cst_8 {dimension_numbers = #tpu.dot_dimension_numbers<[1], [0], [0], [1], [0, 0, 1, 1], [], []>} : vector<8x128xbf16>, vector<128x128xbf16>, vector<8x128xf32> -> vector<8x128xf32>
    %16 = vector.broadcast %7 : vector<1x128xf32> to vector<8x128xf32>
    %17 = arith.addf %15, %16 : vector<8x128xf32>
    %cst_9 = arith.constant 0.000000e+00 : f32
    %18 = vector.broadcast %cst_9 : f32 to vector<8x128xf32>
    %19 = arith.maximumf %17, %18 : vector<8x128xf32>
    %20 = arith.truncf %19 : vector<8x128xf32> to vector<8x128xbf16>
    %cst_10 = arith.constant dense<0.000000e+00> : vector<8x128xf32>
    %21 = tpu.matmul %20, %4, %cst_10 {dimension_numbers = #tpu.dot_dimension_numbers<[1], [0], [0], [1], [0, 0, 1, 1], [], []>} : vector<8x128xbf16>, vector<128x128xbf16>, vector<8x128xf32> -> vector<8x128xf32>
    %22 = vector.broadcast %8 : vector<1x128xf32> to vector<8x128xf32>
    %23 = arith.addf %21, %22 : vector<8x128xf32>
    %24 = tpu.iota {dimensions = array<i32: 1>} : vector<8x128xi32>
    %c4_i32 = arith.constant 4 : i32
    %25 = vector.broadcast %c4_i32 : i32 to vector<8x128xi32>
    %26 = arith.cmpi slt, %24, %25 : vector<8x128xi32>
    %cst_11 = arith.constant 0xFF800000 : f32
    %27 = vector.broadcast %cst_11 : f32 to vector<8x128xf32>
    %28 = arith.select %26, %23, %27 : vector<8x128xi1>, vector<8x128xf32>
    %cst_12 = arith.constant dense<0xFF800000> : vector<8xf32>
    %29 = vector.multi_reduction <maximumf>, %28, %cst_12 [1] : vector<8x128xf32> to vector<8xf32>
    %30 = vector.shape_cast %29 : vector<8xf32> to vector<8x1xf32>
    %31 = vector.broadcast %30 : vector<8x1xf32> to vector<8x128xf32>
    %32 = arith.subf %28, %31 : vector<8x128xf32>
    %33 = math.exp %32 : vector<8x128xf32>
    %cst_13 = arith.constant dense<0.000000e+00> : vector<8xf32>
    %34 = vector.multi_reduction <add>, %33, %cst_13 [1] : vector<8x128xf32> to vector<8xf32>
    %35 = vector.shape_cast %34 : vector<8xf32> to vector<8x1xf32>
    %cst_14 = arith.constant 1.000000e+00 : f32
    %36 = vector.broadcast %cst_14 : f32 to vector<8x1xf32>
    %37 = arith.divf %36, %35 : vector<8x1xf32>
    %38 = vector.broadcast %37 : vector<8x1xf32> to vector<8x128xf32>
    %39 = arith.mulf %33, %38 : vector<8x128xf32>
    %c4_i32_15 = arith.constant 4 : i32
    %40 = vector.broadcast %c4_i32_15 : i32 to vector<8x128xi32>
    %41 = arith.cmpi eq, %24, %40 : vector<8x128xi32>
    %cst_16 = arith.constant 0.000000e+00 : f32
    %42 = vector.broadcast %cst_16 : f32 to vector<8x128xf32>
    %43 = arith.select %41, %23, %42 : vector<8x128xi1>, vector<8x128xf32>
    %44 = arith.addf %39, %43 : vector<8x128xf32>
    %c0_17 = arith.constant 0 : index
    %c0_18 = arith.constant 0 : index
    %45 = vector.load %arg4[%c0_17, %c0_18] : memref<8x128xf32, #tpu.memory_space<vmem>>, vector<8x128xf32>
    tpu.vector_store %arg4[%c0_17, %c0_18], %44 {strides = array<i32>} : memref<8x128xf32, #tpu.memory_space<vmem>>, vector<8x128xf32>,
    return
  }
  func.func @transform_0(%arg0: i32) -> (i32, i32) {
    %c0_i32 = arith.constant 0 : i32
    %c0_i32_0 = arith.constant 0 : i32
    return %arg0, %c0_i32 : i32, i32
  }
  func.func @transform_1(%arg0: i32) -> (i32, i32) {
    %c0_i32 = arith.constant 0 : i32
    %c0_i32_0 = arith.constant 0 : i32
    %c0_i32_1 = arith.constant 0 : i32
    return %c0_i32, %c0_i32_0 : i32, i32
  }
  func.func @transform_2(%arg0: i32) -> (i32, i32) {
    %c0_i32 = arith.constant 0 : i32
    %c0_i32_0 = arith.constant 0 : i32
    %c0_i32_1 = arith.constant 0 : i32
    return %c0_i32, %c0_i32_0 : i32, i32
  }
  func.func @transform_3(%arg0: i32) -> (i32, i32) {
    %c0_i32 = arith.constant 0 : i32
    %c0_i32_0 = arith.constant 0 : i32
    return %arg0, %c0_i32 : i32, i32
  }
}

</mosaic_0001>

<bundles_post_ra>
// kernel: tpu_custom_call.1
= control target key start
LH: loop header
LB: loop body
LE: loop exit
PB: predicated region body
PF: predicated region fallthrough
CT: control target
= control target key end

     0   :  { %8 = vsyncpa [#allocation3], 0  ;;  %s686_s0 = inlined_call_operand.hbm [shape: f32[8,32], index: 0, kind: input, shape index: {}]   ;;  %s687_s1 = inlined_call_operand.hbm [shape: bf16[288,128], index: 1, kind: input, shape index: {}]   ;;  %s688_s2 = inlined_call_operand.hbm [shape: f32[8,128], index: 2, kind: input, shape index: {}]   ;;  %s689_s3 = inlined_call_operand.hbm [shape: f32[8,128], index: 3, kind: output, shape index: {}]  }
   0x1   :  { %9 = vsyncpa [#allocation6], 0 }
   0x2   :  { %10 = vsyncpa [#allocation4], 0  ;;  %s586_s12 = smov [#allocation5]   ;;  %s492_s16 = scalar_lea.hbm %s687_s1, 2304 }
   0x3   :  { %s26_s13 = sshll.u32 %s586_s12, 4  ;;  %p493_p0 = scmp.ne.s32.totalorder %s687_s1, %s492_s16  ;;  %s27_s13 = int_to_ptr.vmem [resolvable:$true] %s26_s13 }
   0x4   :  { %p496_p1 = scmp.lt.u32.totalorder %s492_s16, %s687_s1 }
   0x6   :  { %p498_p2 = pnand %p496_p1, %p493_p0 }
   0x8   :  { %501 = shalt.err (!%p498_p2)
}
   0x9   :  { %s502_s21 = scalar_lea.vmem %s27_s13, 2304  ;;  %p507_p4 = scmp.lt.s32.totalorder %s27_s13, %s27_s13 }
   0xa   :  { %p503_p3 = scmp.ne.s32.totalorder %s27_s13, %s502_s21  ;;  %p508_p5 = scmp.lt.s32.totalorder %s502_s21, %s502_s21 }
   0xc   :  { %p509_p6 = por %p508_p5, %p507_p4 }
   0xe   :  { %p510_p7 = pnand %p509_p6, %p503_p3 }
  0x10   :  { %513 = shalt.err (!%p510_p7)
}
  0x11   :  { %s587_s22 = smov 64   ;;  %s588_s23 = smov 4  }
  0x12   :  { %32 = dma.hbm_to_vmem [thread:$0]  %s687_s1, 2304, %s27_s13, [#allocation6], %s587_s22, %s587_s22, %s588_s23  }
  0x13   :  { %s589_s26 = smov [#allocation2]   ;;  %s590_s28 = smov [#allocation7]  }
  0x14   :  { %s17_s27 = sshll.u32 %s589_s26, 4  ;;  %s39_s29 = sshll.u32 %s590_s28, 4  ;;  %s18_s27 = int_to_ptr.vmem [resolvable:$true] %s17_s27  ;;  %s40_s29 = int_to_ptr.vmem [resolvable:$true] %s39_s29 }
  0x15   :  { %s514_s5 = scalar_lea.hbm %s686_s0, 128 }
  0x16   :  { %p515_p8 = scmp.ne.s32.totalorder %s686_s0, %s514_s5  ;;  %p518_p9 = scmp.lt.u32.totalorder %s514_s5, %s686_s0 }
  0x18   :  { %p520_p10 = pnand %p518_p9, %p515_p8 }
  0x1a   :  { %523 = shalt.err (!%p520_p10)
}
  0x1b   :  { %s524_s1 = scalar_lea.vmem %s18_s27, 128  ;;  %p529_p12 = scmp.lt.s32.totalorder %s18_s27, %s18_s27 }
  0x1c   :  { %p525_p11 = scmp.ne.s32.totalorder %s18_s27, %s524_s1  ;;  %p530_p13 = scmp.lt.s32.totalorder %s524_s1, %s524_s1 }
  0x1e   :  { %p531_p0 = por %p530_p13, %p529_p12 }
  0x20   :  { %p532_p1 = pnand %p531_p0, %p525_p11 }
  0x22   :  { %535 = shalt.err (!%p532_p1)
}
  0x23   :  { %20 = dma.hbm_to_vmem [thread:$0]  %s686_s0, 128, %s18_s27, [#allocation3]  }
  0x24   :  { %s536_s14 = scalar_lea.hbm %s688_s2, 128 }
  0x25   :  { %p537_p2 = scmp.ne.s32.totalorder %s688_s2, %s536_s14  ;;  %p540_p3 = scmp.lt.u32.totalorder %s536_s14, %s688_s2 }
  0x27   :  { %p542_p4 = pnand %p540_p3, %p537_p2 }
  0x29   :  { %545 = shalt.err (!%p542_p4)
}
  0x2a   :  { %s546_s19 = scalar_lea.vmem %s40_s29, 128  ;;  %p551_p6 = scmp.lt.s32.totalorder %s40_s29, %s40_s29 }
  0x2b   :  { %p547_p5 = scmp.ne.s32.totalorder %s40_s29, %s546_s19  ;;  %p552_p7 = scmp.lt.s32.totalorder %s546_s19, %s546_s19 }
  0x2d   :  { %p553_p8 = por %p552_p7, %p551_p6 }
  0x2f   :  { %p554_p9 = pnand %p553_p8, %p547_p5 }
  0x31   :  { %557 = shalt.err (!%p554_p9)
}
  0x32   :  { %42 = dma.hbm_to_vmem [thread:$0]  %s688_s2, 128, %s40_s29, [#allocation6]  }
  0x33   :  { %580 = dma.done.wait [#allocation3], 128  }
  0x34   :  { %581 = vsyncadd [#allocation3], 4294967168 }
  0x35   :  { %582 = dma.done.wait [#allocation6], 2432  }
  0x36   :  { %583 = vsyncadd [#allocation6], 4294964864  ;;  %v591_v0 = vmov 0.0   ;;  %vm592_vm0 = vmmov 0   ;;  %v470_v1 = vld [vmem:[#allocation5] sm:$0xff]   ;;  %v471_v2 = vld [vmem:[#allocation5 + $0x8] sm:$0xff]   ;;  %v92_v19 = vlaneseq }
  0x37   :  { %414 = vmatprep.subr.bf16.mxu0 %v591_v0  ;;  %418 = vmatprep.mubr.msk.bf16.mxu0 %vm592_vm0, %v591_v0  ;;  %v53_v3 = vld [vmem:[#allocation2] sm:$0xff]  ;;  %v472_v4 = vld [vmem:[#allocation5 + $0x10] sm:$0xff]   ;;  %vm108_vm1 = vcmask 261120   ;;  %v474_v7 = vld [vmem:[#allocation5 + $0x20] sm:$0xff]   ;;  %s593_s2 = smov [#allocation8]  }
  0x38   :  { %422 = vmatprep.subr.bf16.mxu1 %v591_v0  ;;  %438 = vmatprep.mubr.msk.bf16.mxu1 %vm592_vm0, %v591_v0  ;;  %v54_v5 = vpack.c.bf16 %v53_v3, %v53_v3  ;;  %v473_v6 = vld [vmem:[#allocation5 + $0x18] sm:$0xff]   ;;  %v475_v8 = vld [vmem:[#allocation5 + $0x28] sm:$0xff]   ;;  %v476_v9 = vld [vmem:[#allocation5 + $0x30] sm:$0xff]   ;;  %v93_v20 = vshrl.u32 %v92_v19, 7  ;;  %v341_v43 = vand.u32 127, %v92_v19  ;;  %s364_s21 = sshll.u32 %s593_s2, 4  ;;  %s365_s21 = int_to_ptr.vmem [resolvable:$true] %s364_s21 }
  0x39   :  { %415 = vmatpush3.bf16.msra.mxu0 %v470_v1  ;;  %423 = vmatpush3.bf16.msra.mxu1 %v472_v4  ;;  %v477_v10 = vld [vmem:[#allocation5 + $0x38] sm:$0xff]   ;;  %v478_v11 = vld [vmem:[#allocation5 + $0x40] sm:$0xff]   ;;  %v479_v12 = vld [vmem:[#allocation5 + $0x48] sm:$0xff]   ;;  %s558_s22 = scalar_lea.vmem %s365_s21, 128  ;;  %p563_p11 = scmp.lt.s32.totalorder %s365_s21, %s365_s21 }
  0x3a   :  { %416 = vmatprep.subr.bf16.mxu0 %v591_v0  ;;  %424 = vmatprep.subr.bf16.mxu1 %v591_v0  ;;  %v480_v13 = vld [vmem:[#allocation5 + $0x50] sm:$0xff]   ;;  %v481_v14 = vld [vmem:[#allocation5 + $0x58] sm:$0xff]   ;;  %v482_v15 = vld [vmem:[#allocation5 + $0x60] sm:$0xff]   ;;  %v94_v21 = vsub.s32 0, %v93_v20  ;;  %v156_v33 = vsub.s32 1, %v93_v20  ;;  %v250_v42 = vsub.s32 2, %v93_v20  ;;  %p559_p10 = scmp.ne.s32.totalorder %s365_s21, %s558_s22  ;;  %p564_p12 = scmp.lt.s32.totalorder %s558_s22, %s558_s22 }
  0x3b   :  { %v483_v16 = vld [vmem:[#allocation5 + $0x68] sm:$0xff]   ;;  %v484_v17 = vld [vmem:[#allocation5 + $0x70] sm:$0xff]   ;;  %v485_v18 = vld [vmem:[#allocation5 + $0x78] sm:$0xff]   ;;  %vm354_vm2 = vcmp.eq.s32.totalorder %v341_v43, 4  ;;  %vm342_vm3 = vcmp.lt.s32.totalorder %v341_v43, 4 }
  0x3c   :  { %v91_v22 = vld [vmem:[#allocation7] sm:$0xff]  ;;  %v486_v31 = vld [vmem:[#allocation5 + $0x80] sm:$0xff]   ;;  %v487_v32 = vld [vmem:[#allocation5 + $0x88] sm:$0xff]   ;;  %p565_p13 = por %p564_p12, %p563_p11 }
  0x3d   :  { %417 = vmatpush3.bf16.msra.mxu0 %v471_v2  ;;  %425 = vmatpush3.bf16.msra.mxu1 %v473_v6  ;;  %v95_v23 = vrot.slane %v91_v22, %v94_v21  ;;  %v157_v34 = vrot.slane %v91_v22, %v156_v33  ;;  %v251_v44 = vrot.slane %v91_v22, %v250_v42 }
  0x3e   :  { %442 = vmatprep.subr.bf16.mxu0 %v591_v0  ;;  %426 = vmatprep.subr.bf16.mxu1 %v591_v0  ;;  %p566_p0 = pnand %p565_p13, %p559_p10 }
  0x40   :  { %419 = vmatmul.mubr.msk.bf16.vlgmr.msra.gmra.mrb[0].mxu0 %vm108_vm1, %v54_v5 }
  0x41   :  { %458 = vmatprep.mubr.msk.bf16.mxu0 %vm592_vm0, %v591_v0  ;;  %427 = vmatpush3.bf16.msra.mxu1 %v474_v7 }
  0x42   :  { %428 = vmatprep.subr.bf16.mxu1 %v591_v0  ;;  %443 = vmatpush3.bf16.msra.mxu0 %v480_v13 }
  0x43   :  { %444 = vmatprep.subr.bf16.mxu0 %v591_v0 }
  0x45   :  { %429 = vmatpush3.bf16.msra.mxu1 %v475_v8 }
  0x46   :  { %430 = vmatprep.subr.bf16.mxu1 %v591_v0  ;;  %445 = vmatpush3.bf16.msra.mxu0 %v481_v14 }
  0x47   :  { %446 = vmatprep.subr.bf16.mxu0 %v591_v0 }
  0x49   :  { %431 = vmatpush3.bf16.msra.mxu1 %v476_v9 }
  0x4a   :  { %432 = vmatprep.subr.bf16.mxu1 %v591_v0  ;;  %447 = vmatpush3.bf16.msra.mxu0 %v482_v15 }
  0x4b   :  { %448 = vmatprep.subr.bf16.mxu0 %v591_v0 }
  0x4d   :  { %433 = vmatpush3.bf16.msra.mxu1 %v477_v10 }
  0x4e   :  { %434 = vmatprep.subr.bf16.mxu1 %v591_v0  ;;  %449 = vmatpush3.bf16.msra.mxu0 %v483_v16 }
  0x4f   :  { %450 = vmatprep.subr.bf16.mxu0 %v591_v0 }
  0x51   :  { %435 = vmatpush3.bf16.msra.mxu1 %v478_v11 }
  0x52   :  { %436 = vmatprep.subr.bf16.mxu1 %v591_v0  ;;  %451 = vmatpush3.bf16.msra.mxu0 %v484_v17 }
  0x53   :  { %452 = vmatprep.subr.bf16.mxu0 %v591_v0 }
  0x55   :  { %437 = vmatpush3.bf16.msra.mxu1 %v479_v12 }
  0x56   :  { %453 = vmatpush3.bf16.msra.mxu0 %v485_v18 }
  0x57   :  { %454 = vmatprep.subr.bf16.mxu0 %v591_v0 }
  0x5a   :  { %455 = vmatpush3.bf16.msra.mxu0 %v486_v31 }
  0x5b   :  { %456 = vmatprep.subr.bf16.mxu0 %v591_v0 }
  0x5e   :  { %457 = vmatpush3.bf16.msra.mxu0 %v487_v32 }
 0x113   :  { %v146_v24 = vpop.f32.mrb[0].mxu0 }
 0x114   :  { %v147_v25 = vadd.f32 %v146_v24, %v95_v23  ;;  %v420_v26 = vpop.f32.mrb[1].mxu0 }
 0x115   :  { %v149_v27 = vpop.f32.mrb[2].mxu0 }
 0x116   :  { %v152_v28 = vmax.f32 %v147_v25, 0.0  ;;  %v421_v29 = vpop.f32.mrb[3].mxu0 }
 0x118   :  { %v153_v30 = vpack.c.bf16 %v152_v28, %v152_v28 }
 0x11a   :  { %439 = vmatmul.mubr.bf16.vlgmr.msra.gmra.mrb[0].mxu1 %v153_v30 }
 0x1ed   :  { %v240_v35 = vpop.f32.mrb[0].mxu1 }
 0x1ee   :  { %v241_v36 = vadd.f32 %v240_v35, %v157_v34  ;;  %v440_v37 = vpop.f32.mrb[1].mxu1 }
 0x1ef   :  { %v243_v38 = vpop.f32.mrb[2].mxu1 }
 0x1f0   :  { %v246_v39 = vmax.f32 %v241_v36, 0.0  ;;  %v441_v40 = vpop.f32.mrb[3].mxu1 }
 0x1f2   :  { %v247_v41 = vpack.c.bf16 %v246_v39, %v246_v39 }
 0x1f4   :  { %459 = vmatmul.mubr.bf16.vlgmr.msra.gmra.mrb[4].mxu0 %v247_v41 }
 0x2c7   :  { %v334_v45 = vpop.f32.mrb[4].mxu0 }
 0x2c8   :  { %v335_v46 = vadd.f32 %v334_v45, %v251_v44  ;;  %v460_v47 = vpop.f32.mrb[5].mxu0 }
 0x2c9   :  { %v337_v48 = vpop.f32.mrb[6].mxu0 }
 0x2ca   :  { %v355_v49 = vsel %vm354_vm2, %v335_v46, 0.0  ;;  %v461_v50 = vpop.f32.mrb[7].mxu0  ;;  %v343_v51 = vsel %vm342_vm3, %v335_v46, -inf }
 0x2cb   :  { %344 = vmax.xlane.f32.xlu0 %v343_v51 }
 0x358   :  { %v345_v52 = vpop.xlane.xlu0 %344 }
 0x359   :  { %v346_v53 = vsub.f32 %v343_v51, %v345_v52 }
 0x35b   :  { %v347_v54 = vmul.f32 1.442695, %v346_v53 }
 0x35d   :  { %488 = vpow2.f32 %v347_v54 }
 0x367   :  { %v489_v55 = vpop.eup %488 }
 0x368   :  { %349 = vadd.xlane.f32.xlu0 %v489_v55 }
 0x3f5   :  { %v350_v56 = vpop.xlane.xlu0 %349 }
 0x3f6   :  { %490 = vrcp.f32 %v350_v56 }
 0x400   :  { %v491_v57 = vpop.eup %490 }
 0x401   :  { %v353_v58 = vmul.f32 %v491_v57, %v489_v55 }
 0x403   :  { %v356_v59 = vadd.f32 %v355_v49, %v353_v58 }
 0x405   :  { %357 = vst [vmem:[#allocation8] sm:$0xff] %v356_v59 }
 0x406   :  { %569 = shalt.err (!%p566_p0)
}
 0x407   :  { %s570_s25 = scalar_lea.hbm %s689_s3, 128 }
 0x408   :  { %p571_p1 = scmp.ne.s32.totalorder %s689_s3, %s570_s25  ;;  %p574_p2 = scmp.lt.u32.totalorder %s570_s25, %s689_s3 }
 0x40a   :  { %p576_p3 = pnand %p574_p2, %p571_p1 }
 0x40c   :  { %579 = shalt.err (!%p576_p3)
}
 0x40d   :  { %367 = dma.vmem_to_hbm [thread:$0]  %s365_s21, 128, %s689_s3, [#allocation4]  }
 0x40e   :  { %584 = dma.done.wait [#allocation4], 128  }
 0x40f   :  { %585 = vsyncadd [#allocation4], 4294967168 }
 0x410   :  { %371 = vsyncpa [#allocation3], 1 }
 0x411   :  { %372 = vsyncpa [#allocation6], 1 }
 0x412   :  { %373 = vsyncpa [#allocation4], 1 }

</bundles_post_ra>
